<compile_context>
chip_gen: v5e
topology: v5e:2x2
jax: 0.10.0
libtpu: 0.0.40
codegen_flags: <defaults>
</compile_context>

<pallas_src>
import functools

import jax
import jax.numpy as jnp
from jax import lax
from jax.experimental import pallas as pl
from jax.experimental.pallas import tpu as pltpu


# ---------------------------------------------------------------------------
# In-kernel helpers (channels-on-sublanes, time-on-lanes layout)
# ---------------------------------------------------------------------------
def _conv1d_same_im2col(xm, w_slab, b, kernel_size):
    """xm: (C, Tp) masked input (columns >= T are zero).
    w_slab: (F, K*C) with w_slab[f, d*C + c] = w_torch[f, c, d].
    b: (F, 1).  Returns (F, Tp) f32.

    'same' zero padding falls out of the lane roll: for valid columns the
    wrapped indices land in the zero tail, so no per-tap masking is needed.
    """
    _, Tp = xm.shape
    pad = kernel_size // 2
    taps = []
    for d in range(kernel_size):
        shift = (pad - d) % Tp          # result[c, t] = xm[c, t + d - pad]
        taps.append(xm if shift == 0 else pltpu.roll(xm, shift=shift, axis=1))
    im2col = taps[0] if kernel_size == 1 else jnp.concatenate(taps, axis=0)
    return jnp.dot(w_slab, im2col, preferred_element_type=jnp.float32) + b


def _layernorm_channels(h, gamma, beta, eps=1e-4):
    """h: (F, Tp); normalize over the channel axis (sublanes, axis 0)."""
    mean = jnp.mean(h, axis=0, keepdims=True)
    var = jnp.mean(jnp.square(h - mean), axis=0, keepdims=True)
    return (h - mean) * lax.rsqrt(var + eps) * gamma + beta


# ---------------------------------------------------------------------------
# Pallas kernel: one batch element per grid step
# ---------------------------------------------------------------------------
def duration_predictor_kernel(
    x_ref, m_ref,
    w1_ref, w2_ref, wp_ref,
    pv_ref, bp_ref,
    o_ref,
    *, kernel_size,
):
    x = x_ref[0]          # (Cin, Tp)  channels on sublanes, time on lanes
    m = m_ref[0]          # (1,  Tp)   lane-dense mask row

    # Packed per-channel params: columns [b1, g1, be1, b2, g2, be2]
    pv = pv_ref[...]                                   # (F, 6)
    b1, g1, be1 = pv[:, 0:1], pv[:, 1:2], pv[:, 2:3]
    b2, g2, be2 = pv[:, 3:4], pv[:, 4:5], pv[:, 5:6]

    # conv_1(x * mask) -> relu -> layernorm   (dropout = identity, eval)
    h = _conv1d_same_im2col(x * m, w1_ref[...], b1, kernel_size)
    h = jnp.maximum(h, 0.0)
    h = _layernorm_channels(h, g1, be1)

    # conv_2(h * mask) -> relu -> layernorm   (dropout = identity, eval)
    h = _conv1d_same_im2col(h * m, w2_ref[...], b2, kernel_size)
    h = jnp.maximum(h, 0.0)
    h = _layernorm_channels(h, g2, be2)

    # proj (1x1 conv): (1, F) @ (F, Tp) -> (1, Tp), lane-dense output
    out = jnp.dot(wp_ref[...], h * m, preferred_element_type=jnp.float32)
    out = out + bp_ref[0, 0]
    o_ref[0] = (out * m).astype(o_ref.dtype)


# ---------------------------------------------------------------------------
# Wrapper
# ---------------------------------------------------------------------------
@functools.partial(jax.jit, static_argnames=("kernel_size",))
def duration_predictor_forward(x, x_mask, params, kernel_size):
    """x: (B, C_in, T), x_mask: (B, 1, T) -> (B, 1, T)."""
    B, Cin, T = x.shape
    K = kernel_size
    pad = K // 2
    F_ = params["w1"].shape[0]

    # Pad time at the END to a lane-aligned width Tp >= T + pad (mask is zero
    # in the tail, so conv wraparound reads zeros == PyTorch 'same' padding).
    Tp = max(128, -(-(T + pad) // 128) * 128)
    xp = jnp.pad(x, ((0, 0), (0, 0), (0, Tp - T)))
    mp = jnp.pad(x_mask, ((0, 0), (0, 0), (0, Tp - T)))

    # Weight slabs: torch (F, Cin, K) -> (F, K, Cin) -> (F, K*Cin)
    w1 = jnp.transpose(params["w1"], (0, 2, 1)).reshape(F_, K * Cin)
    w2 = jnp.transpose(params["w2"], (0, 2, 1)).reshape(F_, K * F_)
    wp = params["wp"][:, :, 0]                          # (1, F)

    # Pack all per-channel vectors into one (F, 6) block: 1 DMA, 1 VMEM tile.
    pv = jnp.stack(
        [params["b1"], params["g1"], params["be1"],
         params["b2"], params["g2"], params["be2"]], axis=1)   # (F, 6)
    bp = params["bp"].reshape(1, 1)

    full2 = lambda shape: pl.BlockSpec(shape, lambda b: (0, 0))

    # Explicit VMEM budget (generous estimate, clamped for v7x's 64 MiB).
    est_bytes = 4 * (
        2 * (Cin + 1 + 1) * Tp                               # x, mask, out (2x buffered)
        + 2 * (F_ * K * (Cin + F_) + 7 * F_ + 1)             # weight / param slabs
        + (K * max(Cin, F_) + 8 * F_ + 8) * Tp               # in-kernel temporaries
    )
    vmem_limit = int(min(64 * 1024 * 1024, max(2 * est_bytes, 16 * 1024 * 1024)))

    kernel = functools.partial(duration_predictor_kernel, kernel_size=K)

    out_p = pl.pallas_call(
        kernel,
        out_shape=jax.ShapeDtypeStruct((B, 1, Tp), x.dtype),
        grid_spec=pltpu.PrefetchScalarGridSpec(
            num_scalar_prefetch=0,
            grid=(B,),
            in_specs=[
                pl.BlockSpec((1, Cin, Tp), lambda b: (b, 0, 0)),   # x
                pl.BlockSpec((1, 1, Tp), lambda b: (b, 0, 0)),     # mask
                full2((F_, K * Cin)),                              # w1 slab
                full2((F_, K * F_)),                               # w2 slab
                full2((1, F_)),                                    # wp
                full2((F_, 6)),                                    # packed b/g/beta
                pl.BlockSpec((1, 1), lambda b: (0, 0),
                             memory_space=pltpu.MemorySpace.SMEM), # bp (scalar)
            ],
            out_specs=pl.BlockSpec((1, 1, Tp), lambda b: (b, 0, 0)),
        ),
        compiler_params=pltpu.CompilerParams(
            dimension_semantics=("parallel",),
            vmem_limit_bytes=vmem_limit,
        ),
    )(xp, mp, w1, w2, wp, pv, bp)

    return out_p[:, :, :T]


# ---------------------------------------------------------------------------
# Pure-JAX reference (for correctness check)
# ---------------------------------------------------------------------------
def _conv1d_ref(x, w, b, pad):
    # x: (B, C, T), w: (O, I, K), b: (O,)
    K = w.shape[2]
    T = x.shape[2]
    xp = jnp.pad(x, ((0, 0), (0, 0), (pad, pad)))
    out = b[None, :, None]
    for d in range(K):
        out = out + jnp.einsum("bct,oc->bot", xp[:, :, d:d + T], w[:, :, d])
    return out


def _layernorm_ref(x, gamma, beta, eps=1e-4):
    mean = jnp.mean(x, axis=1, keepdims=True)
    var = jnp.mean((x - mean) ** 2, axis=1, keepdims=True)
    xn = (x - mean) * lax.rsqrt(var + eps)
    return xn * gamma[None, :, None] + beta[None, :, None]


def reference_forward(x, x_mask, params, kernel_size):
    pad = kernel_size // 2
    h = _conv1d_ref(x * x_mask, params["w1"], params["b1"], pad)
    h = jnp.maximum(h, 0.0)
    h = _layernorm_ref(h, params["g1"], params["be1"])
    h = _conv1d_ref(h * x_mask, params["w2"], params["b2"], pad)
    h = jnp.maximum(h, 0.0)
    h = _layernorm_ref(h, params["g2"], params["be2"])
    h = _conv1d_ref(h * x_mask, params["wp"], params["bp"], 0)
    return h * x_mask


# ---------------------------------------------------------------------------
if __name__ == "__main__":
    B, Cin, F, T, K = 2, 8, 32, 16, 3

    key = jax.random.PRNGKey(0)
    ks = jax.random.split(key, 8)
    params = {
        "w1": jax.random.normal(ks[0], (F, Cin, K), jnp.float32) * 0.1,
        "b1": jax.random.normal(ks[1], (F,), jnp.float32) * 0.1,
        "g1": jnp.ones((F,), jnp.float32),
        "be1": jnp.zeros((F,), jnp.float32),
        "w2": jax.random.normal(ks[2], (F, F, K), jnp.float32) * 0.1,
        "b2": jax.random.normal(ks[3], (F,), jnp.float32) * 0.1,
        "g2": jnp.ones((F,), jnp.float32),
        "be2": jnp.zeros((F,), jnp.float32),
        "wp": jax.random.normal(ks[4], (1, F, 1), jnp.float32) * 0.1,
        "bp": jax.random.normal(ks[5], (1,), jnp.float32) * 0.1,
    }

    x = jax.random.normal(ks[6], (B, Cin, T), jnp.float32)
    lengths = jnp.array([T, T - 4])
    t_ids = jnp.arange(T)[None, None, :]
    x_mask = (t_ids < lengths[:, None, None]).astype(jnp.float32)   # (B, 1, T)

    out = duration_predictor_forward(x, x_mask, params, K)
    out = jax.block_until_ready(out)

    ref = reference_forward(x, x_mask, params, K)
    assert out.shape == (B, 1, T)
    max_err = float(jnp.max(jnp.abs(out - ref)))
    assert jnp.allclose(out, ref, atol=2e-4, rtol=2e-4), max_err

    print("KERNEL_OK")
</pallas_src>

<mosaic_0001>
module attributes {stable_mosaic.version = 11 : i64} {
  func.func @duration_predictor_kernel(%arg0: i32, %arg1: memref<1x8x128xf32, #tpu.memory_space<vmem>>, %arg2: memref<1x1x128xf32, #tpu.memory_space<vmem>>, %arg3: memref<32x24xf32, #tpu.memory_space<vmem>>, %arg4: memref<32x96xf32, #tpu.memory_space<vmem>>, %arg5: memref<1x32xf32, #tpu.memory_space<vmem>>, %arg6: memref<32x6xf32, #tpu.memory_space<vmem>>, %arg7: memref<1x1xf32, #tpu.memory_space<smem>>, %arg8: memref<1x1x128xf32, #tpu.memory_space<vmem>>) attributes {dimension_semantics = [#tpu.dimension_semantics<parallel>], iteration_bounds = array<i64: 2>, scalar_prefetch = 0 : i64, scratch_operands = 0 : i64, tpu.core_type = #tpu.core_type<tc>, window_params = [{transform_indices = @transform_0, window_bounds = array<i64: 1, 8, 128>}, {transform_indices = @transform_1, window_bounds = array<i64: 1, 1, 128>}, {pipeline_mode = #tpu.pipeline_mode<synchronous>, transform_indices = @transform_2, window_bounds = array<i64: 32, 24>}, {pipeline_mode = #tpu.pipeline_mode<synchronous>, transform_indices = @transform_3, window_bounds = array<i64: 32, 96>}, {pipeline_mode = #tpu.pipeline_mode<synchronous>, transform_indices = @transform_4, window_bounds = array<i64: 1, 32>}, {pipeline_mode = #tpu.pipeline_mode<synchronous>, transform_indices = @transform_5, window_bounds = array<i64: 32, 6>}, {transform_indices = @transform_6, window_bounds = array<i64: 1, 1>}, {transform_indices = @transform_7, window_bounds = array<i64: 1, 1, 128>}]} {
    %c0 = arith.constant 0 : index
    %c0_0 = arith.constant 0 : index
    %c0_1 = arith.constant 0 : index
    %0 = vector.load %arg1[%c0, %c0_0, %c0_1] : memref<1x8x128xf32, #tpu.memory_space<vmem>>, vector<1x8x128xf32>
    %1 = vector.shape_cast %0 : vector<1x8x128xf32> to vector<8x128xf32>
    %c0_2 = arith.constant 0 : index
    %c0_3 = arith.constant 0 : index
    %c0_4 = arith.constant 0 : index
    %2 = vector.load %arg2[%c0_2, %c0_3, %c0_4] : memref<1x1x128xf32, #tpu.memory_space<vmem>>, vector<1x1x128xf32>
    %3 = vector.shape_cast %2 : vector<1x1x128xf32> to vector<1x128xf32>
    %c0_5 = arith.constant 0 : index
    %c0_6 = arith.constant 0 : index
    %4 = vector.load %arg6[%c0_5, %c0_6] : memref<32x6xf32, #tpu.memory_space<vmem>>, vector<32x6xf32>
    %5 = vector.extract_strided_slice %4 {offsets = [0, 0], sizes = [32, 1], strides = [1, 1]} : vector<32x6xf32> to vector<32x1xf32>
    %6 = vector.extract_strided_slice %4 {offsets = [0, 1], sizes = [32, 1], strides = [1, 1]} : vector<32x6xf32> to vector<32x1xf32>
    %7 = vector.extract_strided_slice %4 {offsets = [0, 2], sizes = [32, 1], strides = [1, 1]} : vector<32x6xf32> to vector<32x1xf32>
    %8 = vector.extract_strided_slice %4 {offsets = [0, 3], sizes = [32, 1], strides = [1, 1]} : vector<32x6xf32> to vector<32x1xf32>
    %9 = vector.extract_strided_slice %4 {offsets = [0, 4], sizes = [32, 1], strides = [1, 1]} : vector<32x6xf32> to vector<32x1xf32>
    %10 = vector.extract_strided_slice %4 {offsets = [0, 5], sizes = [32, 1], strides = [1, 1]} : vector<32x6xf32> to vector<32x1xf32>
    %11 = vector.broadcast %3 : vector<1x128xf32> to vector<8x128xf32>
    %12 = arith.mulf %1, %11 : vector<8x128xf32>
    %c0_7 = arith.constant 0 : index
    %c0_8 = arith.constant 0 : index
    %13 = vector.load %arg3[%c0_7, %c0_8] : memref<32x24xf32, #tpu.memory_space<vmem>>, vector<32x24xf32>
    %c1_i32 = arith.constant 1 : i32
    %14 = tpu.dynamic_rotate %12 by %c1_i32 dim 1 : vector<8x128xf32>, i32 -> vector<8x128xf32>
    %c127_i32 = arith.constant 127 : i32
    %15 = tpu.dynamic_rotate %12 by %c127_i32 dim 1 : vector<8x128xf32>, i32 -> vector<8x128xf32>
    %16 = tpu.concatenate %14, %12, %15 in 0 : vector<8x128xf32>, vector<8x128xf32>, vector<8x128xf32> -> vector<24x128xf32>
    %cst = arith.constant dense<0.000000e+00> : vector<32x128xf32>
    %17 = tpu.matmul %13, %16, %cst {dimension_numbers = #tpu.dot_dimension_numbers<[1], [0], [0], [1], [0, 0, 1, 1], [], []>} : vector<32x24xf32>, vector<24x128xf32>, vector<32x128xf32> -> vector<32x128xf32>
    %18 = vector.broadcast %5 : vector<32x1xf32> to vector<32x128xf32>
    %19 = arith.addf %17, %18 : vector<32x128xf32>
    %cst_9 = arith.constant 0.000000e+00 : f32
    %20 = vector.broadcast %cst_9 : f32 to vector<32x128xf32>
    %21 = arith.maximumf %19, %20 : vector<32x128xf32>
    %cst_10 = arith.constant dense<0.000000e+00> : vector<128xf32>
    %22 = vector.multi_reduction <add>, %21, %cst_10 [0] : vector<32x128xf32> to vector<128xf32>
    %23 = vector.shape_cast %22 : vector<128xf32> to vector<1x128xf32>
    %cst_11 = arith.constant 3.200000e+01 : f32
    %24 = vector.broadcast %cst_11 : f32 to vector<1x128xf32>
    %25 = arith.divf %23, %24 : vector<1x128xf32>
    %26 = vector.broadcast %25 : vector<1x128xf32> to vector<32x128xf32>
    %27 = arith.subf %21, %26 : vector<32x128xf32>
    %28 = arith.mulf %27, %27 : vector<32x128xf32>
    %cst_12 = arith.constant dense<0.000000e+00> : vector<128xf32>
    %29 = vector.multi_reduction <add>, %28, %cst_12 [0] : vector<32x128xf32> to vector<128xf32>
    %30 = vector.shape_cast %29 : vector<128xf32> to vector<1x128xf32>
    %cst_13 = arith.constant 3.200000e+01 : f32
    %31 = vector.broadcast %cst_13 : f32 to vector<1x128xf32>
    %32 = arith.divf %30, %31 : vector<1x128xf32>
    %33 = vector.broadcast %25 : vector<1x128xf32> to vector<32x128xf32>
    %34 = arith.subf %21, %33 : vector<32x128xf32>
    %cst_14 = arith.constant 9.99999974E-5 : f32
    %35 = vector.broadcast %cst_14 : f32 to vector<1x128xf32>
    %36 = arith.addf %32, %35 : vector<1x128xf32>
    %37 = math.rsqrt %36 : vector<1x128xf32>
    %38 = vector.broadcast %37 : vector<1x128xf32> to vector<32x128xf32>
    %39 = arith.mulf %34, %38 : vector<32x128xf32>
    %40 = vector.broadcast %6 : vector<32x1xf32> to vector<32x128xf32>
    %41 = arith.mulf %39, %40 : vector<32x128xf32>
    %42 = vector.broadcast %7 : vector<32x1xf32> to vector<32x128xf32>
    %43 = arith.addf %41, %42 : vector<32x128xf32>
    %44 = vector.broadcast %3 : vector<1x128xf32> to vector<32x128xf32>
    %45 = arith.mulf %43, %44 : vector<32x128xf32>
    %c0_15 = arith.constant 0 : index
    %c0_16 = arith.constant 0 : index
    %46 = vector.load %arg4[%c0_15, %c0_16] : memref<32x96xf32, #tpu.memory_space<vmem>>, vector<32x96xf32>
    %c1_i32_17 = arith.constant 1 : i32
    %47 = tpu.dynamic_rotate %45 by %c1_i32_17 dim 1 : vector<32x128xf32>, i32 -> vector<32x128xf32>
    %c127_i32_18 = arith.constant 127 : i32
    %48 = tpu.dynamic_rotate %45 by %c127_i32_18 dim 1 : vector<32x128xf32>, i32 -> vector<32x128xf32>
    %49 = tpu.concatenate %47, %45, %48 in 0 : vector<32x128xf32>, vector<32x128xf32>, vector<32x128xf32> -> vector<96x128xf32>
    %cst_19 = arith.constant dense<0.000000e+00> : vector<32x128xf32>
    %50 = tpu.matmul %46, %49, %cst_19 {dimension_numbers = #tpu.dot_dimension_numbers<[1], [0], [0], [1], [0, 0, 1, 1], [], []>} : vector<32x96xf32>, vector<96x128xf32>, vector<32x128xf32> -> vector<32x128xf32>
    %51 = vector.broadcast %8 : vector<32x1xf32> to vector<32x128xf32>
    %52 = arith.addf %50, %51 : vector<32x128xf32>
    %cst_20 = arith.constant 0.000000e+00 : f32
    %53 = vector.broadcast %cst_20 : f32 to vector<32x128xf32>
    %54 = arith.maximumf %52, %53 : vector<32x128xf32>
    %cst_21 = arith.constant dense<0.000000e+00> : vector<128xf32>
    %55 = vector.multi_reduction <add>, %54, %cst_21 [0] : vector<32x128xf32> to vector<128xf32>
    %56 = vector.shape_cast %55 : vector<128xf32> to vector<1x128xf32>
    %cst_22 = arith.constant 3.200000e+01 : f32
    %57 = vector.broadcast %cst_22 : f32 to vector<1x128xf32>
    %58 = arith.divf %56, %57 : vector<1x128xf32>
    %59 = vector.broadcast %58 : vector<1x128xf32> to vector<32x128xf32>
    %60 = arith.subf %54, %59 : vector<32x128xf32>
    %61 = arith.mulf %60, %60 : vector<32x128xf32>
    %cst_23 = arith.constant dense<0.000000e+00> : vector<128xf32>
    %62 = vector.multi_reduction <add>, %61, %cst_23 [0] : vector<32x128xf32> to vector<128xf32>
    %63 = vector.shape_cast %62 : vector<128xf32> to vector<1x128xf32>
    %cst_24 = arith.constant 3.200000e+01 : f32
    %64 = vector.broadcast %cst_24 : f32 to vector<1x128xf32>
    %65 = arith.divf %63, %64 : vector<1x128xf32>
    %66 = vector.broadcast %58 : vector<1x128xf32> to vector<32x128xf32>
    %67 = arith.subf %54, %66 : vector<32x128xf32>
    %cst_25 = arith.constant 9.99999974E-5 : f32
    %68 = vector.broadcast %cst_25 : f32 to vector<1x128xf32>
    %69 = arith.addf %65, %68 : vector<1x128xf32>
    %70 = math.rsqrt %69 : vector<1x128xf32>
    %71 = vector.broadcast %70 : vector<1x128xf32> to vector<32x128xf32>
    %72 = arith.mulf %67, %71 : vector<32x128xf32>
    %73 = vector.broadcast %9 : vector<32x1xf32> to vector<32x128xf32>
    %74 = arith.mulf %72, %73 : vector<32x128xf32>
    %75 = vector.broadcast %10 : vector<32x1xf32> to vector<32x128xf32>
    %76 = arith.addf %74, %75 : vector<32x128xf32>
    %c0_26 = arith.constant 0 : index
    %c0_27 = arith.constant 0 : index
    %77 = vector.load %arg5[%c0_26, %c0_27] : memref<1x32xf32, #tpu.memory_space<vmem>>, vector<1x32xf32>
    %78 = vector.broadcast %3 : vector<1x128xf32> to vector<32x128xf32>
    %79 = arith.mulf %76, %78 : vector<32x128xf32>
    %cst_28 = arith.constant dense<0.000000e+00> : vector<1x128xf32>
    %80 = tpu.matmul %77, %79, %cst_28 {dimension_numbers = #tpu.dot_dimension_numbers<[1], [0], [0], [1], [0, 0, 1, 1], [], []>} : vector<1x32xf32>, vector<32x128xf32>, vector<1x128xf32> -> vector<1x128xf32>
    %c0_29 = arith.constant 0 : index
    %c0_30 = arith.constant 0 : index
    %81 = memref.load %arg7[%c0_29, %c0_30] : memref<1x1xf32, #tpu.memory_space<smem>>
    %82 = vector.broadcast %81 : f32 to vector<1x128xf32>
    %83 = arith.addf %80, %82 : vector<1x128xf32>
    %84 = arith.mulf %83, %3 : vector<1x128xf32>
    %c0_31 = arith.constant 0 : index
    %c0_32 = arith.constant 0 : index
    %c0_33 = arith.constant 0 : index
    %85 = vector.load %arg8[%c0_31, %c0_32, %c0_33] : memref<1x1x128xf32, #tpu.memory_space<vmem>>, vector<1x1x128xf32>
    %86 = vector.shape_cast %85 : vector<1x1x128xf32> to vector<1x128xf32>
    %87 = vector.shape_cast %84 : vector<1x128xf32> to vector<1x1x128xf32>
    tpu.vector_store %arg8[%c0_31, %c0_32, %c0_33], %87 {strides = array<i32>} : memref<1x1x128xf32, #tpu.memory_space<vmem>>, vector<1x1x128xf32>,
    return
  }
  func.func @transform_0(%arg0: i32) -> (i32, i32, i32) {
    %c0_i32 = arith.constant 0 : i32
    %c0_i32_0 = arith.constant 0 : i32
    %c0_i32_1 = arith.constant 0 : i32
    return %arg0, %c0_i32, %c0_i32_0 : i32, i32, i32
  }
  func.func @transform_1(%arg0: i32) -> (i32, i32, i32) {
    %c0_i32 = arith.constant 0 : i32
    %c0_i32_0 = arith.constant 0 : i32
    %c0_i32_1 = arith.constant 0 : i32
    return %arg0, %c0_i32, %c0_i32_0 : i32, i32, i32
  }
  func.func @transform_2(%arg0: i32) -> (i32, i32) {
    %c0_i32 = arith.constant 0 : i32
    %c0_i32_0 = arith.constant 0 : i32
    %c0_i32_1 = arith.constant 0 : i32
    return %c0_i32, %c0_i32_0 : i32, i32
  }
  func.func @transform_3(%arg0: i32) -> (i32, i32) {
    %c0_i32 = arith.constant 0 : i32
    %c0_i32_0 = arith.constant 0 : i32
    %c0_i32_1 = arith.constant 0 : i32
    return %c0_i32, %c0_i32_0 : i32, i32
  }
  func.func @transform_4(%arg0: i32) -> (i32, i32) {
    %c0_i32 = arith.constant 0 : i32
    %c0_i32_0 = arith.constant 0 : i32
    %c0_i32_1 = arith.constant 0 : i32
    return %c0_i32, %c0_i32_0 : i32, i32
  }
  func.func @transform_5(%arg0: i32) -> (i32, i32) {
    %c0_i32 = arith.constant 0 : i32
    %c0_i32_0 = arith.constant 0 : i32
    %c0_i32_1 = arith.constant 0 : i32
    return %c0_i32, %c0_i32_0 : i32, i32
  }
  func.func @transform_6(%arg0: i32) -> (i32, i32) {
    %c0_i32 = arith.constant 0 : i32
    %c0_i32_0 = arith.constant 0 : i32
    %c0_i32_1 = arith.constant 0 : i32
    return %c0_i32, %c0_i32_0 : i32, i32
  }
  func.func @transform_7(%arg0: i32) -> (i32, i32, i32) {
    %c0_i32 = arith.constant 0 : i32
    %c0_i32_0 = arith.constant 0 : i32
    %c0_i32_1 = arith.constant 0 : i32
    return %arg0, %c0_i32, %c0_i32_0 : i32, i32, i32
  }
}

</mosaic_0001>

<bundles_post_ra>
// kernel: duration_predictor_forward.1
= control target key start
LH: loop header
LB: loop body
LE: loop exit
PB: predicated region body
PF: predicated region fallthrough
CT: control target
= control target key end

     0   :  { %s1167_s0 = inlined_call_operand.vmem [shape: f32[2,8,128], index: 0, kind: input, shape index: {}]   ;;  %s1168_s1 = inlined_call_operand.vmem [shape: f32[2,1,128], index: 1, kind: input, shape index: {}]   ;;  %s1169_s2 = inlined_call_operand.vmem [shape: f32[32,24], index: 2, kind: input, shape index: {}]   ;;  %s1170_s3 = inlined_call_operand.vmem [shape: f32[32,96], index: 3, kind: input, shape index: {}]   ;;  %s1171_s4 = inlined_call_operand.vmem [shape: f32[1,32], index: 4, kind: input, shape index: {}]   ;;  %s1172_s5 = inlined_call_operand.vmem [shape: f32[32,6], index: 5, kind: input, shape index: {}]   ;;  %s1173_s6 = inlined_call_operand.<no memory space> [shape: f32[1,1], index: 6, kind: input, shape index: {}]   ;;  %s1174_s7 = inlined_call_operand.hbm [shape: f32[2,1,128], index: 7, kind: output, shape index: {}]  }
   0x1   :  { %12 = sst [smem:[#allocation2]] %s1173_s6 }
   0x2   :  { %13 = vsyncpa [#allocation4], 0 }
   0x3   :  { %15 = vsyncpa [#allocation4 + $0x1], 0  ;;  %s977_s26 = smov 0   ;;  %s979_s27 = smov 0  }
   0x4   :  { %s981_s28 = smov 0   ;;  %s983_s29 = smov 0  }
   0x5 LB: > { %s998_s6 = sadd.s32 4294967295, %s923_s29   ;;  %s741_s30 = sadd.s32 4294967294, %s923_s29   ;;  %s923_s29 = sphi %s983_s29, %s1180_s29   ;;  %s919_s28 = sphi %s981_s28, %s1179_s28   ;;  %s915_s27 = sphi %s979_s27, %s1178_s27   ;;  %s911_s26 = sphi %s977_s26, %s1177_s26  }
   0x6   : > { %s1002_s8 = sadd.s32 1, %s923_s29   ;;  %s185_s9 = sadd.s32 1, %s919_s28 }
   0x7   : > { %s182_s10 = ssub.s32 %s923_s29, %s1002_s8  ;;  %p195_p0 = scmp.ne.s32.totalorder %s919_s28, %s915_s27 }
   0x8   : > { %p183_p1 = scmp.eq.s32.totalorder %s182_s10, 0  ;;  %p196_p2 = scmp.eq.s32.totalorder %s998_s6, 1 }
   0x9   : > { %p201_p3 = scmp.ne.s32.totalorder %s915_s27, %s911_s26  ;;  %p202_p4 = scmp.eq.s32.totalorder %s741_s30, 1 }
   0xa   : > { %s1013_s11 = scalar_select %p183_p1, %s919_s28, %s185_s9  }
   0xb   : > { %p1015_p5 = por %p196_p2, %p195_p0  ;;  %p1019_p6 = por %p202_p4, %p201_p3 }
   0xc   : > { %p744_p7 = scmp.ge.s32.totalorder %s923_s29, 1  ;;  %p248_p8 = scmp.lt.s32.totalorder %s923_s29, 3 }
   0xe   : > { %p249_p9 = pnand %p744_p7, %p248_p8 }
   0xf   : > { %p281_p10 = scmp.lt.s32.totalorder (!%p249_p9), %s998_s6, 1  ;;  %s925_s22 = smov (!%p249_p9), 127  }
  0x10   : > { %252 = sbr.rel (%p249_p9) target bundleno = 874 (0x36a), region = 48  ;;  %s926_s23 = smov (!%p249_p9), 1  }
  0x11   : > { %s636_s24 = sld [smem:[#allocation2]] (!%p249_p9)  ;;  %s279_s25 = sand.u32 (!%p249_p9), 1, %s915_s27  }
  0x15   : > { %s282_s14 = scalar_select %p281_p10, %s998_s6, 1  ;;  %v1044_v3 = vld [vmem:[%s1172_s5] sm:$0xff]  ;;  %v927_v4 = vmov 0   ;;  %v1050_v5 = vld [vmem:[%s1172_s5 + $0x8] sm:$0xff]  ;;  %v1056_v7 = vld [vmem:[%s1172_s5 + $0x10] sm:$0xff]  ;;  %v928_v9 = vmov 1  }
  0x16   : > { %817 = vset.pattern.permute.xlu1 %v927_v4  ;;  %818 = vset.pattern.permute.xlu2 %v927_v4  ;;  %v1062_v8 = vld [vmem:[%s1172_s5 + $0x18] sm:$0xff]  ;;  %v298_v10 = vld [vmem:[%s1169_s2] sm:$0xff]  ;;  %vm326_vm0 = vcmask 195584   ;;  %v299_v12 = vld [vmem:[%s1169_s2 + $0x8] sm:$0xff]  ;;  %v929_v13 = vmov 2   ;;  %v930_v21 = vmov 32.0  }
  0x17   : > { %s745_s15 = sshll.u32 %s282_s14, 3  ;;  %s1030_s18 = scalar_lea.vmem %s1168_s1, %s282_s14  ;;  %308 = vperm.xlu1 %817, %v1044_v3   ;;  %318 = vperm.xlu2 %818, %v1056_v7   ;;  %v300_v14 = vld [vmem:[%s1169_s2 + $0x10] sm:$0xff]  ;;  %v301_v15 = vld [vmem:[%s1169_s2 + $0x18] sm:$0xff]  ;;  %855 = vrcp.f32 %v930_v21  ;;  %vm502_vm5 = vcmask 785408   ;;  %vm638_vm9 = vcmask 261120  }
  0x18   : > { %s284_s21 = scalar_lea.vmem %s1167_s0, %s745_s15  ;;  %v1036_v0 = vld [vmem:[%s1030_s18] ss:$0 sm:$0xff]  ;;  %819 = vset.pattern.permute.xlu0 %v928_v9  ;;  %s665_s15 = scalar_lea.sflag [#allocation4], %s279_s25 }
  0x19   : > { %v288_v1 = vld [vmem:[%s284_s21] sm:$0xff] }
  0x1a   : > { %v297_v2 = vmul.f32 %v1036_v0, %v288_v1 }
  0x1c   : > { %304 = vrot.lane.b32.xlu0 %v297_v2, %s925_s22 }
  0x1d   : > { %v856_v26 = vpop.eup %855 }
  0x1e   : > { %v382_v32 = vmul.f32 32.0, %v856_v26  ;;  %vm386_vm1 = vweird.f32 %v856_v26 }
  0x1f   : > { %313 = vperm.xlu1 %817, %v1050_v5   ;;  %323 = vperm.xlu2 %818, %v1062_v8  }
  0x20   : > { %v383_v37 = vsub.f32 1.0, %v382_v32 }
  0x22   : > { %v384_v40 = vmul.f32 %v856_v26, %v383_v37 }
  0x24   : > { %302 = vrot.lane.b32.xlu0 %v297_v2, %s926_s23  ;;  %v385_v43 = vadd.f32 %v856_v26, %v384_v40 }
  0x26   : > { %v1089_v46 = vsel %vm386_vm1, %v856_v26, %v385_v43 }
  0x27   : > { %820 = vset.pattern.permute.xlu1 %v928_v9  ;;  %821 = vset.pattern.permute.xlu2 %v929_v13 }
  0x28   : > { %431 = vperm.xlu1 %820, %v1056_v7   ;;  %455 = vperm.xlu2 %821, %v1062_v8  }
  0x2c   : > { %435 = vperm.xlu0 %819, %v1062_v8  }
  0x30   : > { %427 = vperm.xlu1 %820, %v1050_v5   ;;  %451 = vperm.xlu2 %821, %v1056_v7  }
  0x34   : > { %423 = vperm.xlu0 %819, %v1044_v3  }
  0x38   : > { %822 = vset.pattern.permute.xlu1 %v929_v13  ;;  %443 = vperm.xlu2 %821, %v1044_v3  }
  0x39   : > { %447 = vperm.xlu1 %822, %v1050_v5  }
  0x71   : > { %v319_v19 = vpop.permute.xlu2 %318 }
  0x79   : > { %v324_v30 = vpop.permute.xlu2 %323 }
  0x82   : > { %v456_v9 = vpop.permute.xlu2 %455 }
  0x89   : > { %v309_v17 = vpop.permute.xlu1 %308 }
  0x8e   : > { %v305_v6 = vpop.permute.xlu0 %304 }
  0x8f   : > { %352 = vmatpush.msra.mxu0 %v305_v6 }
  0x91   : > { %353 = vmatpush.msra.mxu0 %v297_v2  ;;  %v314_v20 = vpop.permute.xlu1 %313 }
  0x96   : > { %v303_v11 = vpop.permute.xlu0 %302 }
  0x97   : > { %354 = vmatpush.msra.mxu0 %v303_v11 }
  0x98   : > { %746 = vmatmul.msk.f32.vlgmr.msra.gmra.mxu0 %vm326_vm0, %v298_v10 }
  0x9a   : > { %v432_v10 = vpop.permute.xlu1 %431 }
  0xa0   : > { %747 = vmatmul.msk.f32.gmra.mxu0 %vm326_vm0, %v299_v12 }
  0xa8   : > { %748 = vmatmul.msk.f32.gmra.mxu0 %vm326_vm0, %v300_v14  ;;  %v436_v14 = vpop.permute.xlu0 %435 }
  0xb0   : > { %749 = vmatmul.msk.f32.gmra.mxu0 %vm326_vm0, %v301_v15 }
 0x115   : > { %v356_v16 = vpop.f32.mrf.mxu0 }
 0x116   : > { %v357_v24 = vadd.f32 %v356_v16, %v309_v17  ;;  %v452_v16 = vpop.permute.xlu2 %451  ;;  %v428_v17 = vpop.permute.xlu1 %427 }
 0x118   : > { %v368_v28 = vmax.f32 %v357_v24, 0.0 }
 0x11d   : > { %v359_v18 = vpop.f32.mrf.mxu0 }
 0x11e   : > { %v360_v23 = vadd.f32 %v359_v18, %v314_v20  ;;  %v448_v26 = vpop.permute.xlu1 %447 }
 0x120   : > { %v369_v27 = vmax.f32 %v360_v23, 0.0 }
 0x122   : > { %v372_v33 = vadd.f32 %v369_v27, %v368_v28 }
 0x125   : > { %v362_v22 = vpop.f32.mrf.mxu0 }
 0x126   : > { %v363_v25 = vadd.f32 %v362_v22, %v319_v19 }
 0x128   : > { %v370_v29 = vmax.f32 %v363_v25, 0.0  ;;  %v424_v25 = vpop.permute.xlu0 %423 }
 0x12a   : > { %v373_v35 = vadd.f32 %v372_v33, %v370_v29 }
 0x12d   : > { %v365_v31 = vpop.f32.mrf.mxu0 }
 0x12e   : > { %v366_v34 = vadd.f32 %v365_v31, %v324_v30  ;;  %v444_v31 = vpop.permute.xlu2 %443 }
 0x130   : > { %v371_v36 = vmax.f32 %v366_v34, 0.0 }
 0x132   : > { %v374_v38 = vadd.f32 %v373_v35, %v371_v36 }
 0x134   : > { %v375_v39 = vrot.slane %v374_v38, 4 }
 0x136   : > { %v376_v41 = vadd.f32 %v375_v39, %v374_v38 }
 0x138   : > { %v377_v42 = vrot.slane %v376_v41, 2 }
 0x13a   : > { %v378_v44 = vadd.f32 %v377_v42, %v376_v41  ;;  %v931_v42 = vmov 3  }
 0x13b   : > { %843 = vset.pattern.permute.xlu1 %v931_v42  ;;  %845 = vset.pattern.permute.xlu0 %v931_v42 }
 0x13c   : > { %v379_v45 = vrot.slane %v378_v44, 1  ;;  %844 = vset.pattern.permute.xlu2 %v931_v42 }
 0x13e   : > { %v380_v47 = vadd.f32 %v379_v45, %v378_v44 }
 0x140   : > { %v388_v48 = vmul.f32 %v1089_v46, %v380_v47 }
 0x142   : > { %v389_v49 = vsub.f32 %v368_v28, %v388_v48  ;;  %v390_v50 = vsub.f32 %v369_v27, %v388_v48  ;;  %v391_v51 = vsub.f32 %v370_v29, %v388_v48  ;;  %v392_v52 = vsub.f32 %v371_v36, %v388_v48 }
 0x143   : > { %v932_v48 = vmov 4  }
 0x144   : > { %v393_v53 = vmul.f32 %v389_v49, %v389_v49  ;;  %v394_v54 = vmul.f32 %v390_v50, %v390_v50  ;;  %v395_v55 = vmul.f32 %v391_v51, %v391_v51  ;;  %v396_v57 = vmul.f32 %v392_v52, %v392_v52 }
 0x146   : > { %v397_v56 = vadd.f32 %v394_v54, %v393_v53 }
 0x148   : > { %v398_v58 = vadd.f32 %v397_v56, %v395_v55 }
 0x14a   : > { %v399_v59 = vadd.f32 %v398_v58, %v396_v57  ;;  %v466_v58 = vld [vmem:[%s1170_s3] sm:$0xff] }
 0x14c   : > { %v400_v60 = vrot.slane %v399_v59, 4 }
 0x14e   : > { %v401_v61 = vadd.f32 %v400_v60, %v399_v59  ;;  %v468_v59 = vld [vmem:[%s1170_s3 + $0x10] sm:$0xff]  ;;  %v469_v60 = vld [vmem:[%s1170_s3 + $0x18] sm:$0xff] }
 0x150   : > { %v402_v62 = vrot.slane %v401_v61, 2 }
 0x152   : > { %v403_v63 = vadd.f32 %v402_v62, %v401_v61 }
 0x154   : > { %v404_v1 = vrot.slane %v403_v63, 1 }
 0x156   : > { %v405_v2 = vadd.f32 %v404_v1, %v403_v63 }
 0x158   : > { %v406_v4 = vmul.f32 %v405_v2, %v1089_v46 }
 0x15a   : > { %v407_v6 = vadd.f32 0.0001, %v406_v4 }
 0x15c   : > { %857 = vrsqrt.f32 %v407_v6  ;;  %vm414_vm3 = vweird.f32 %v407_v6 }
 0x162   : > { %v858_v11 = vpop.eup %857 }
 0x163   : > { %v409_v12 = vmul.f32 %v858_v11, %v407_v6  ;;  %vm415_vm2 = vweird.f32 %v858_v11 }
 0x164   : > { %vm416_vm4 = vmor %vm414_vm3, %vm415_vm2 }
 0x165   : > { %v410_v13 = vmul.f32 %v858_v11, %v409_v12 }
 0x167   : > { %v411_v15 = vmul.f32 0.5, %v410_v13 }
 0x169   : > { %v412_v18 = vsub.f32 1.5, %v411_v15 }
 0x16b   : > { %v413_v19 = vmul.f32 %v858_v11, %v412_v18 }
 0x16d   : > { %v417_v20 = vsel %vm416_vm4, %v858_v11, %v413_v19 }
 0x16e   : > { %v420_v21 = vmul.f32 %v417_v20, %v391_v51  ;;  %v421_v22 = vmul.f32 %v417_v20, %v392_v52  ;;  %v419_v23 = vmul.f32 %v417_v20, %v390_v50  ;;  %v418_v24 = vmul.f32 %v417_v20, %v389_v49 }
 0x16f   : > { %v933_v52 = vmov 5  }
 0x170   : > { %v440_v27 = vmul.f32 %v432_v10, %v420_v21  ;;  %v441_v28 = vmul.f32 %v436_v14, %v421_v22  ;;  %v439_v29 = vmul.f32 %v428_v17, %v419_v23  ;;  %v438_v30 = vmul.f32 %v424_v25, %v418_v24 }
 0x172   : > { %v460_v32 = vadd.f32 %v452_v16, %v440_v27  ;;  %v461_v33 = vadd.f32 %v456_v9, %v441_v28  ;;  %v458_v34 = vadd.f32 %v444_v31, %v438_v30  ;;  %v459_v35 = vadd.f32 %v448_v26, %v439_v29 }
 0x174   : > { %v464_v36 = vmul.f32 %v1036_v0, %v460_v32  ;;  %v465_v37 = vmul.f32 %v1036_v0, %v461_v33  ;;  %v462_v38 = vmul.f32 %v1036_v0, %v458_v34  ;;  %v463_v39 = vmul.f32 %v1036_v0, %v459_v35 }
 0x176   : > { %v833_v40 = vpack.i.bf16 %v464_v36, %v465_v37  ;;  %v828_v41 = vpack.i.bf16 %v462_v38, %v463_v39 }
 0x178   : > { %834 = vrot.lane.b32.xlu2 %v833_v40, %s926_s23  ;;  %824 = vrot.lane.b32.xlu0 %v833_v40, %s925_s22 }
 0x179   : > { %829 = vrot.lane.b32.xlu1 %v828_v41, %s925_s22  ;;  %s673_s22 = scalar_lea.hbm %s1174_s7, %s998_s6 }
 0x17a   : > { %s677_s14 = sshll.u32 %s673_s22, 4  ;;  %s678_s14 = int_to_ptr.hbm [resolvable:$true] %s677_s14 }
 0x17b   : > { %s875_s16 = sshra.s32 %s678_s14, 4  ;;  %s876_s16 = int_to_ptr.hbm [resolvable:$true] %s875_s16 }
 0x17c   : > { %s877_s17 = scalar_lea.hbm %s876_s16, 1  ;;  %p882_p0 = scmp.lt.s32.totalorder %s876_s16, %s1174_s7 }
 0x17d   : > { %p878_p11 = scmp.ne.s32.totalorder %s876_s16, %s877_s17 }
 0x17f   : > { %p879_p12 = pnand %p878_p11, %p1015_p5 }
 0x180   : > { %839 = vrot.lane.b32.xlu0 %v828_v41, %s926_s23  ;;  %491 = vperm.xlu2 %844, %v1050_v5   ;;  %s280_s23 = scalar_lea.vmem [#allocation3], %s279_s25 }
 0x181   : > { %487 = vperm.xlu1 %843, %v1044_v3   ;;  %s675_s10 = sshll.u32 %s280_s23, 4  ;;  %p880_p13 = pneg %p879_p12  ;;  %s676_s10 = int_to_ptr.vmem [resolvable:$true] %s675_s10 }
 0x188   : > { %495 = vperm.xlu0 %845, %v1056_v7   ;;  %846 = vset.pattern.permute.xlu2 %v932_v48 }
 0x189   : > { %499 = vperm.xlu1 %843, %v1062_v8   ;;  %604 = vperm.xlu2 %846, %v1062_v8  }
 0x190   : > { %849 = vset.pattern.permute.xlu0 %v932_v48 }
 0x191   : > { %596 = vperm.xlu0 %849, %v1050_v5   ;;  %847 = vset.pattern.permute.xlu1 %v932_v48 }
 0x192   : > { %600 = vperm.xlu1 %847, %v1056_v7   ;;  %848 = vset.pattern.permute.xlu2 %v933_v52 }
 0x193   : > { %624 = vperm.xlu2 %848, %v1062_v8   ;;  %v467_v8 = vld [vmem:[%s1170_s3 + $0x8] sm:$0xff] }
 0x199   : > { %853 = vset.pattern.permute.xlu0 %v933_v52 }
 0x19a   : > { %850 = vset.pattern.permute.xlu1 %v933_v52 }
 0x19b   : > { %620 = vperm.xlu1 %850, %v1056_v7   ;;  %851 = vset.pattern.permute.xlu2 %v932_v48 }
 0x19c   : > { %592 = vperm.xlu2 %851, %v1044_v3  }
 0x1a3   : > { %616 = vperm.xlu1 %850, %v1050_v5  }
 0x1a4   : > { %852 = vset.pattern.permute.xlu2 %v933_v52 }
 0x1a5   : > { %612 = vperm.xlu2 %852, %v1044_v3  }
 0x1d2   : > { %v835_v51 = vpop.permute.xlu2 %834 }
 0x1d3   : > { %v836_v53 = vunpack.i.l.bf16 %v835_v51  ;;  %v837_v55 = vunpack.i.h.bf16 %v835_v51 }
 0x1da   : > { %v492_v63 = vpop.permute.xlu2 %491 }
 0x1e3   : > { %v605_v41 = vpop.permute.xlu2 %604 }
 0x1ea   : > { %v825_v43 = vpop.permute.xlu0 %824 }
 0x1eb   : > { %v826_v44 = vunpack.i.l.bf16 %v825_v43  ;;  %v830_v45 = vpop.permute.xlu1 %829  ;;  %v827_v47 = vunpack.i.h.bf16 %v825_v43 }
 0x1ec   : > { %v831_v49 = vunpack.i.l.bf16 %v830_v45  ;;  %v832_v50 = vunpack.i.h.bf16 %v830_v45 }
 0x1ed   : > { %519 = vmatpush.msra.mxu1 %v826_v44  ;;  %757 = vmatpush.msra.mxu3 %v826_v44 }
 0x1ef   : > { %520 = vmatpush.msra.mxu1 %v827_v47  ;;  %758 = vmatpush.msra.mxu3 %v827_v47  ;;  %v625_v47 = vpop.permute.xlu2 %624 }
 0x1f1   : > { %521 = vmatpush.msra.mxu1 %v831_v49  ;;  %759 = vmatpush.msra.mxu3 %v831_v49 }
 0x1f2   : > { %v840_v54 = vpop.permute.xlu0 %839 }
 0x1f3   : > { %522 = vmatpush.msra.mxu1 %v832_v50  ;;  %760 = vmatpush.msra.mxu3 %v832_v50  ;;  %v841_v56 = vunpack.i.l.bf16 %v840_v54  ;;  %v842_v57 = vunpack.i.h.bf16 %v840_v54  ;;  %v488_v61 = vpop.permute.xlu1 %487 }
 0x1f5   : > { %523 = vmatpush.msra.mxu1 %v465_v37  ;;  %761 = vmatpush.msra.mxu3 %v465_v37 }
 0x1f7   : > { %524 = vmatpush.msra.mxu1 %v464_v36  ;;  %762 = vmatpush.msra.mxu3 %v464_v36  ;;  %v593_v54 = vpop.permute.xlu2 %592 }
 0x1f9   : > { %525 = vmatpush.msra.mxu1 %v463_v39  ;;  %763 = vmatpush.msra.mxu3 %v463_v39 }
 0x1fa   : > { %v496_v2 = vpop.permute.xlu0 %495 }
 0x1fb   : > { %526 = vmatpush.msra.mxu1 %v462_v38  ;;  %764 = vmatpush.msra.mxu3 %v462_v38  ;;  %v500_v13 = vpop.permute.xlu1 %499 }
 0x1fd   : > { %527 = vmatpush.msra.mxu1 %v836_v53  ;;  %765 = vmatpush.msra.mxu3 %v836_v53 }
 0x1ff   : > { %528 = vmatpush.msra.mxu1 %v837_v55  ;;  %766 = vmatpush.msra.mxu3 %v837_v55 }
 0x201   : > { %529 = vmatpush.msra.mxu1 %v841_v56  ;;  %767 = vmatpush.msra.mxu3 %v841_v56 }
 0x203   : > { %530 = vmatpush.msra.mxu1 %v842_v57  ;;  %768 = vmatpush.msra.mxu3 %v842_v57  ;;  %v597_v57 = vpop.permute.xlu0 %596 }
 0x204   : > { %750 = vmatmul.msk.f32.vlgmr.msra.gmra.mxu1 %vm502_vm5, %v466_v58  ;;  %752 = vmatmul.msk.f32.vlgmr.msra.gmra.mxu3 %vm502_vm5, %v468_v59  ;;  %v601_v45 = vpop.permute.xlu1 %600 }
 0x20c   : > { %751 = vmatmul.msk.f32.gmra.mxu1 %vm502_vm5, %v467_v8  ;;  %753 = vmatmul.msk.f32.gmra.mxu3 %vm502_vm5, %v469_v60 }
 0x20d   : > { %v621_v53 = vpop.permute.xlu1 %620 }
 0x281   : > { %v532_v7 = vpop.f32.mrf.mxu1 }
 0x282   : > { %v533_v1 = vadd.f32 %v532_v7, %v488_v61 }
 0x284   : > { %v544_v9 = vmax.f32 %v533_v1, 0.0 }
 0x287   : > { %v538_v62 = vpop.f32.mrf.mxu3 }
 0x288   : > { %v539_v10 = vadd.f32 %v538_v62, %v496_v2  ;;  %v617_v2 = vpop.permute.xlu1 %616 }
 0x289   : > { %v535_v4 = vpop.f32.mrf.mxu1 }
 0x28a   : > { %v536_v6 = vadd.f32 %v535_v4, %v492_v63  ;;  %v546_v5 = vmax.f32 %v539_v10, 0.0  ;;  %v613_v4 = vpop.permute.xlu2 %612 }
 0x28c   : > { %v545_v11 = vmax.f32 %v536_v6, 0.0 }
 0x28e   : > { %v548_v12 = vadd.f32 %v545_v11, %v544_v9 }
 0x28f   : > { %v541_v14 = vpop.f32.mrf.mxu3 }
 0x290   : > { %v542_v15 = vadd.f32 %v541_v14, %v500_v13  ;;  %v549_v17 = vadd.f32 %v548_v12, %v546_v5  ;;  %v631_v14 = vld [vmem:[%s1171_s4] sm:$0x1] }
 0x292   : > { %v547_v16 = vmax.f32 %v542_v15, 0.0  ;;  %v289_v15 = vld [vmem:[%s1030_s18] sm:$0x1]  ;;  %s881_s18 = scalar_lea.hbm %s1174_s7, 2 }
 0x293   : > { %p883_p1 = scmp.lt.s32.totalorder %s881_s18, %s877_s17 }
 0x294   : > { %v550_v18 = vadd.f32 %v549_v17, %v547_v16 }
 0x295   : > { %p884_p2 = por %p883_p1, %p882_p0 }
 0x296   : > { %v551_v3 = vrot.slane %v550_v18, 4 }
 0x297   : > { %p885_p3 = pnand %p884_p2, %p880_p13 }
 0x298   : > { %v552_v19 = vadd.f32 %v551_v3, %v550_v18 }
 0x29a   : > { %v553_v20 = vrot.slane %v552_v19, 2 }
 0x29c   : > { %v554_v21 = vadd.f32 %v553_v20, %v552_v19 }
 0x29e   : > { %v555_v22 = vrot.slane %v554_v21, 1 }
 0x2a0   : > { %v556_v23 = vadd.f32 %v555_v22, %v554_v21 }
 0x2a2   : > { %v557_v24 = vmul.f32 %v556_v23, %v1089_v46 }
 0x2a4   : > { %v558_v25 = vsub.f32 %v544_v9, %v557_v24  ;;  %v559_v26 = vsub.f32 %v545_v11, %v557_v24  ;;  %v560_v27 = vsub.f32 %v546_v5, %v557_v24  ;;  %v561_v28 = vsub.f32 %v547_v16, %v557_v24 }
 0x2a5   : > { %v637_v5 = vstv %s636_s24 }
 0x2a6   : > { %v562_v29 = vmul.f32 %v558_v25, %v558_v25  ;;  %v563_v30 = vmul.f32 %v559_v26, %v559_v26  ;;  %v564_v31 = vmul.f32 %v560_v27, %v560_v27  ;;  %v565_v33 = vmul.f32 %v561_v28, %v561_v28 }
 0x2a8   : > { %v566_v32 = vadd.f32 %v563_v30, %v562_v29 }
 0x2aa   : > { %v567_v34 = vadd.f32 %v566_v32, %v564_v31 }
 0x2ac   : > { %v568_v35 = vadd.f32 %v567_v34, %v565_v33 }
 0x2ae   : > { %v569_v36 = vrot.slane %v568_v35, 4 }
 0x2b0   : > { %v570_v37 = vadd.f32 %v569_v36, %v568_v35 }
 0x2b2   : > { %v571_v38 = vrot.slane %v570_v37, 2 }
 0x2b4   : > { %v572_v39 = vadd.f32 %v571_v38, %v570_v37 }
 0x2b6   : > { %v573_v40 = vrot.slane %v572_v39, 1 }
 0x2b8   : > { %v574_v42 = vadd.f32 %v573_v40, %v572_v39 }
 0x2ba   : > { %v575_v43 = vmul.f32 %v574_v42, %v1089_v46 }
 0x2bc   : > { %v576_v44 = vadd.f32 0.0001, %v575_v43 }
 0x2be   : > { %859 = vrsqrt.f32 %v576_v44  ;;  %vm583_vm7 = vweird.f32 %v576_v44 }
 0x2c4   : > { %v860_v48 = vpop.eup %859 }
 0x2c5   : > { %v578_v49 = vmul.f32 %v860_v48, %v576_v44  ;;  %vm584_vm6 = vweird.f32 %v860_v48 }
 0x2c6   : > { %vm585_vm8 = vmor %vm583_vm7, %vm584_vm6 }
 0x2c7   : > { %v579_v50 = vmul.f32 %v860_v48, %v578_v49 }
 0x2c9   : > { %v580_v51 = vmul.f32 0.5, %v579_v50 }
 0x2cb   : > { %v581_v52 = vsub.f32 1.5, %v580_v51 }
 0x2cd   : > { %v582_v55 = vmul.f32 %v860_v48, %v581_v52 }
 0x2cf   : > { %v586_v56 = vsel %vm585_vm8, %v860_v48, %v582_v55 }
 0x2d0   : > { %v590_v58 = vmul.f32 %v586_v56, %v561_v28  ;;  %v589_v59 = vmul.f32 %v586_v56, %v560_v27  ;;  %v587_v46 = vmul.f32 %v586_v56, %v558_v25  ;;  %v588_v8 = vmul.f32 %v586_v56, %v559_v26 }
 0x2d2   : > { %v610_v60 = vmul.f32 %v605_v41, %v590_v58  ;;  %v609_v7 = vmul.f32 %v601_v45, %v589_v59  ;;  %v608_v61 = vmul.f32 %v597_v57, %v588_v8  ;;  %v607_v1 = vmul.f32 %v593_v54, %v587_v46 }
 0x2d4   : > { %v630_v62 = vadd.f32 %v625_v47, %v610_v60  ;;  %v629_v63 = vadd.f32 %v621_v53, %v609_v7  ;;  %v628_v6 = vadd.f32 %v617_v2, %v608_v61  ;;  %v627_v10 = vadd.f32 %v613_v4, %v607_v1 }
 0x2d6   : > { %v635_v9 = vmul.f32 %v1036_v0, %v630_v62  ;;  %v634_v11 = vmul.f32 %v1036_v0, %v629_v63  ;;  %v633_v12 = vmul.f32 %v1036_v0, %v628_v6  ;;  %v632_v13 = vmul.f32 %v1036_v0, %v627_v10 }
 0x2d8   : > { %654 = vmatpush.msra.mxu2 %v635_v9 }
 0x2da   : > { %655 = vmatpush.msra.mxu2 %v634_v11 }
 0x2dc   : > { %656 = vmatpush.msra.mxu2 %v633_v12 }
 0x2de   : > { %657 = vmatpush.msra.mxu2 %v632_v13 }
 0x2df   : > { %754 = vmatmul.msk.f32.vlgmr.msra.gmra.mxu2 %vm638_vm9, %v631_v14 }
 0x362   : > { %v659_v16 = vpop.f32.mrf.mxu2 }
 0x363   : > { %v660_v0 = vadd.f32 %v659_v16, %v637_v5 }
 0x365   : > { %v662_v17 = vmul.f32 %v660_v0, %v289_v15 }
 0x367   : > { %663 = vst [vmem:[%s280_s23] sm:$0x1] %v662_v17 }
 0x368   : > { %888 = shalt.err (!%p885_p3)
}
 0x369   : > { %769 = dma.vmem_to_hbm [thread:$0]  (%p1015_p5), %s676_s10, 16, %s678_s14, %s665_s15  }
 0x36a PF: > { %p775_p4 = scmp.ge.s32.totalorder %s923_s29, 2  ;;  %s689_s24 = sand.u32 1, %s911_s26  }
 0x36b   : > { %s690_s25 = scalar_lea.sflag [#allocation4], %s689_s24 }
 0x36c   : > { %p772_p7 = pnand %p775_p4, %p1019_p6 }
 0x36e   : > { %p773_p8 = pneg %p772_p7 }
 0x370   : > { %906 = dma.done.wait (%p773_p8), %s690_s25, 16  }
 0x371   : > { %908 = vsyncadd (%p773_p8), %s690_s25, 4294967280  ;;  %p18_p9 = scmp.ge.s32.totalorder %s1002_s8, 4   ;;  %s1177_s26 = smov %s915_s27 }
 0x372   : > { %s1178_s27 = smov %s919_s28  ;;  %s1179_s28 = smov %s1013_s11 }
 0x373   : > { %s1180_s29 = smov %s1002_s8  ;;  %20 = sbr.rel (!%p18_p9) target bundleno = 5 (0x5), region = 86 }
 0x378   :  { %695 = vsyncpa [#allocation4], 1 }
 0x379   :  { %697 = vsyncpa [#allocation4 + $0x1], 1 }

</bundles_post_ra>
